<compile_context>
chip_gen: v5e
topology: v5e:2x2
jax: 0.10.0
libtpu: 0.0.40
codegen_flags: <defaults>
</compile_context>

<pallas_src>
import numpy as np
import jax
import jax.numpy as jnp
from jax.experimental import pallas as pl
from jax.experimental.pallas import tpu as pltpu

# ---- MCRegionLoss config (mirrors __init__, scaled down to small shapes) ----
CNUMS = [4, 4]               # channels per class in each group-block
CGROUPS = [4, 4]             # classes in each group-block
NUM_CLASSES = sum(CGROUPS)   # 8  (sum(cgroups) == num_classes)
C = sum(cn * cg for cn, cg in zip(CNUMS, CGROUPS))   # 32 feature channels


def _build_label() -> np.ndarray:
    """Per-channel spatial target index, exactly as in the PyTorch forward."""
    parts = []
    for i in range(len(CGROUPS)):
        lab = np.repeat(np.arange(CGROUPS[i]), CNUMS[i])
        if i > 0:
            lab = lab + CGROUPS[i - 1]   # spec adds only the previous group size
        parts.append(lab)
    return np.concatenate(parts).astype(np.int32)    # (C,)


def _mcregion_kernel(onehot_ref, feat_ref, ce_ref):
    """Per-block body.

    onehot_ref : (C, HW)       one-hot of `label` over the spatial axis (grid-invariant)
    feat_ref   : (BT, C, HW)   BT samples of the feature map
    ce_ref     : (1, BT, C)    per-(sample, channel) cross-entropy terms
    """
    f = feat_ref[...].astype(jnp.float32)       # upcast in-kernel (bf16-friendly loads)
    onehot = onehot_ref[...]                    # (C, HW) f32

    # stable per-channel logsumexp over the spatial (lane) axis
    m = jnp.max(f, axis=-1, keepdims=True)                   # (BT, C, 1)
    s = jnp.sum(jnp.exp(f - m), axis=-1, keepdims=True)      # (BT, C, 1)
    lse = m[:, :, 0] + jnp.log(s[:, :, 0])                   # (BT, C)

    # feat[d, ch, label[ch]] as a one-hot multiply + lane reduction (no gather)
    picked = jnp.sum(f * onehot[None, :, :], axis=-1)        # (BT, C)

    ce_ref[0] = lse - picked                                 # single merged store


def _choose_tiling(n: int, c: int, hw: int, itemsize: int):
    """Pick (bt, nsteps): big batched blocks, but keep >= 2 grid steps for the
    v7x megacore, and keep the double-buffered feat window well inside the
    scoped-VMEM default on all generations (v5e/v6e 128 MiB, v7x 64 MiB)."""
    budget = 8 * 1024 * 1024                       # ~8 MiB for feat double-buffer
    bt_cap = max(1, budget // (2 * c * hw * itemsize))
    bt_cap = min(bt_cap, 128)
    if n <= 1:
        return 1, 1
    nsteps = max(2, pl.cdiv(n, bt_cap))
    bt = pl.cdiv(n, nsteps)
    nsteps = max(pl.cdiv(n, bt), 2)
    return bt, nsteps


def mc_region_loss(feat, label_onehot):
    """feat: (N, C, H, W) (NCHW, like PyTorch); label_onehot: (C, H*W) float32."""
    n, c, h, w = feat.shape
    hw = h * w
    feat3 = feat.reshape(n, c, hw)                 # keep input dtype; upcast in-kernel

    bt, nsteps = _choose_tiling(n, c, hw, feat3.dtype.itemsize)
    n_pad = bt * nsteps
    if n_pad != n:                                 # pad tail; sliced off before the mean
        feat3 = jnp.pad(feat3, ((0, n_pad - n), (0, 0), (0, 0)))

    ce = pl.pallas_call(
        _mcregion_kernel,
        out_shape=jax.ShapeDtypeStruct((nsteps, bt, c), jnp.float32),
        grid_spec=pltpu.PrefetchScalarGridSpec(
            num_scalar_prefetch=0,
            grid=(nsteps,),
            in_specs=[
                pl.BlockSpec((c, hw), lambda i: (0, 0)),         # one-hot (invariant)
                pl.BlockSpec((bt, c, hw), lambda i: (i, 0, 0)),  # BT samples per step
            ],
            out_specs=pl.BlockSpec((1, bt, c), lambda i: (i, 0, 0)),
        ),
        compiler_params=pltpu.CompilerParams(
            dimension_semantics=("parallel",)),
    )(label_onehot, feat3)

    ce = ce.reshape(n_pad, c)[:n]                  # drop padded samples
    # l_dis = mean over samples of (mean over C channels); all rows have length C,
    # so a single mean over the (N, C) matrix is exact.
    return jnp.mean(ce)


def mc_region_loss_ref(feat, label):
    """Pure-JAX reference mirroring the PyTorch forward exactly."""
    n, c, h, w = feat.shape
    f = feat.reshape(n, c, h * w).astype(jnp.float32)
    lse = jax.nn.logsumexp(f, axis=-1)                                   # (n, c)
    picked = jnp.take_along_axis(f, label[None, :, None], axis=-1)[..., 0]
    return jnp.mean(jnp.mean(lse - picked, axis=-1))


if __name__ == "__main__":
    N, H, W = 2, 16, 16
    key = jax.random.PRNGKey(0)
    feat = jax.random.normal(key, (N, C, H, W), dtype=jnp.float32)

    label = _build_label()                          # (C,) spatial target per channel
    assert int(label.max()) < H * W, "label index must be a valid spatial position"
    onehot_np = np.zeros((C, H * W), dtype=np.float32)
    onehot_np[np.arange(C), label] = 1.0
    onehot = jnp.asarray(onehot_np)

    loss = mc_region_loss(feat, onehot)
    jax.block_until_ready(loss)

    ref = mc_region_loss_ref(feat, jnp.asarray(label))
    np.testing.assert_allclose(np.asarray(loss), np.asarray(ref),
                               rtol=1e-4, atol=1e-4)
    print("KERNEL_OK")
</pallas_src>

<mosaic_0001>
module attributes {stable_mosaic.version = 11 : i64} {
  func.func @_mcregion_kernel(%arg0: i32, %arg1: memref<32x256xf32, #tpu.memory_space<vmem>>, %arg2: memref<1x32x256xf32, #tpu.memory_space<vmem>>, %arg3: memref<1x1x32xf32, #tpu.memory_space<vmem>>) attributes {dimension_semantics = [#tpu.dimension_semantics<parallel>], iteration_bounds = array<i64: 2>, scalar_prefetch = 0 : i64, scratch_operands = 0 : i64, tpu.core_type = #tpu.core_type<tc>, window_params = [{pipeline_mode = #tpu.pipeline_mode<synchronous>, transform_indices = @transform_0, window_bounds = array<i64: 32, 256>}, {transform_indices = @transform_1, window_bounds = array<i64: 1, 32, 256>}, {transform_indices = @transform_2, window_bounds = array<i64: 1, 1, 32>}]} {
    %c0 = arith.constant 0 : index
    %c0_0 = arith.constant 0 : index
    %c0_1 = arith.constant 0 : index
    %0 = vector.load %arg2[%c0, %c0_0, %c0_1] : memref<1x32x256xf32, #tpu.memory_space<vmem>>, vector<1x32x256xf32>
    %c0_2 = arith.constant 0 : index
    %c0_3 = arith.constant 0 : index
    %1 = vector.load %arg1[%c0_2, %c0_3] : memref<32x256xf32, #tpu.memory_space<vmem>>, vector<32x256xf32>
    %cst = arith.constant dense<0xFF800000> : vector<1x32xf32>
    %2 = vector.multi_reduction <maximumf>, %0, %cst [2] : vector<1x32x256xf32> to vector<1x32xf32>
    %3 = vector.shape_cast %2 : vector<1x32xf32> to vector<1x32x1xf32>
    %4 = vector.broadcast %3 : vector<1x32x1xf32> to vector<1x32x256xf32>
    %5 = arith.subf %0, %4 : vector<1x32x256xf32>
    %6 = math.exp %5 : vector<1x32x256xf32>
    %cst_4 = arith.constant dense<0.000000e+00> : vector<1x32xf32>
    %7 = vector.multi_reduction <add>, %6, %cst_4 [2] : vector<1x32x256xf32> to vector<1x32xf32>
    %8 = vector.shape_cast %7 : vector<1x32xf32> to vector<1x32x1xf32>
    %9 = vector.shape_cast %3 : vector<1x32x1xf32> to vector<1x32xf32>
    %10 = vector.shape_cast %8 : vector<1x32x1xf32> to vector<1x32xf32>
    %11 = math.log %10 : vector<1x32xf32>
    %12 = arith.addf %9, %11 : vector<1x32xf32>
    %13 = vector.shape_cast %1 : vector<32x256xf32> to vector<1x32x256xf32>
    %14 = arith.mulf %0, %13 : vector<1x32x256xf32>
    %cst_5 = arith.constant dense<0.000000e+00> : vector<1x32xf32>
    %15 = vector.multi_reduction <add>, %14, %cst_5 [2] : vector<1x32x256xf32> to vector<1x32xf32>
    %16 = arith.subf %12, %15 : vector<1x32xf32>
    %c0_6 = arith.constant 0 : index
    %c0_7 = arith.constant 0 : index
    %c0_8 = arith.constant 0 : index
    %17 = vector.load %arg3[%c0_6, %c0_7, %c0_8] : memref<1x1x32xf32, #tpu.memory_space<vmem>>, vector<1x1x32xf32>
    %18 = vector.shape_cast %17 : vector<1x1x32xf32> to vector<1x32xf32>
    %19 = vector.shape_cast %16 : vector<1x32xf32> to vector<1x1x32xf32>
    tpu.vector_store %arg3[%c0_6, %c0_7, %c0_8], %19 {strides = array<i32>} : memref<1x1x32xf32, #tpu.memory_space<vmem>>, vector<1x1x32xf32>,
    return
  }
  func.func @transform_0(%arg0: i32) -> (i32, i32) {
    %c0_i32 = arith.constant 0 : i32
    %c0_i32_0 = arith.constant 0 : i32
    %c0_i32_1 = arith.constant 0 : i32
    return %c0_i32, %c0_i32_0 : i32, i32
  }
  func.func @transform_1(%arg0: i32) -> (i32, i32, i32) {
    %c0_i32 = arith.constant 0 : i32
    %c0_i32_0 = arith.constant 0 : i32
    %c0_i32_1 = arith.constant 0 : i32
    return %arg0, %c0_i32, %c0_i32_0 : i32, i32, i32
  }
  func.func @transform_2(%arg0: i32) -> (i32, i32, i32) {
    %c0_i32 = arith.constant 0 : i32
    %c0_i32_0 = arith.constant 0 : i32
    %c0_i32_1 = arith.constant 0 : i32
    return %arg0, %c0_i32, %c0_i32_0 : i32, i32, i32
  }
}

</mosaic_0001>

<bundles_post_ra>
// kernel: tpu_custom_call.1
= control target key start
LH: loop header
LB: loop body
LE: loop exit
PB: predicated region body
PF: predicated region fallthrough
CT: control target
= control target key end

     0   :  { %7 = vsyncpa [#allocation3], 0  ;;  %s834_s0 = inlined_call_operand.hbm [shape: f32[32,256], index: 0, kind: input, shape index: {}]   ;;  %s835_s1 = inlined_call_operand.hbm [shape: f32[2,32,256], index: 1, kind: input, shape index: {}]   ;;  %s836_s2 = inlined_call_operand.hbm [shape: f32[2,1,32], index: 2, kind: output, shape index: {}]  }
   0x1   :  { %8 = vsyncpa [#allocation6], 0 }
   0x2   :  { %10 = vsyncpa [#allocation6 + $0x1], 0 }
   0x3   :  { %11 = vsyncpa [#allocation4], 0 }
   0x4   :  { %13 = vsyncpa [#allocation4 + $0x1], 0  ;;  %s639_s9 = smov 0   ;;  %s641_s10 = smov 0  }
   0x5   :  { %s643_s11 = smov 0   ;;  %s645_s12 = smov 0  }
   0x6 LB: > { %s660_s13 = sadd.s32 4294967295, %s619_s12   ;;  %s393_s14 = sadd.s32 4294967294, %s619_s12   ;;  %s619_s12 = sphi %s645_s12, %s846_s12   ;;  %s615_s11 = sphi %s643_s11, %s845_s11   ;;  %s611_s10 = sphi %s641_s10, %s844_s10   ;;  %s607_s9 = sphi %s639_s9, %s843_s9  }
   0x7   : > { %p60_p0 = scmp.ne.s32.totalorder %s611_s10, %s607_s9  ;;  %p61_p1 = scmp.eq.s32.totalorder %s660_s13, 0 }
   0x8   : > { %p84_p2 = scmp.eq.s32.totalorder %s660_s13, 1  ;;  %p90_p3 = scmp.eq.s32.totalorder %s393_s14, 1 }
   0x9   : > { %p669_p4 = por %p61_p1, %p60_p0  ;;  %p394_p5 = scmp.ge.s32.totalorder %s619_s12, 1 }
   0xa   : > { %p674_p6 = por %p90_p3, %p60_p0  ;;  %p97_p7 = scmp.lt.s32.totalorder %s619_s12, 3 }
   0xb   : > { %s108_s19 = sshll.u32 %s834_s0, 4  ;;  %s621_s21 = smov [#allocation2]   ;;  %s109_s19 = int_to_ptr.hbm [resolvable:$true] %s108_s19 }
   0xc   : > { %p682_p8 = pnand %p394_p5, %p97_p7  ;;  %s110_s22 = sshll.u32 %s621_s21, 4  ;;  %s111_s22 = int_to_ptr.vmem [resolvable:$true] %s110_s22 }
   0xd   : > { %s692_s23 = sadd.s32 1, %s619_s12   ;;  %s622_s24 = smov 256  }
   0xe   : > { %p414_p9 = pneg %p682_p8  ;;  %s623_s25 = smov 16  }
   0xf   : > { %s44_s26 = ssub.s32 %s619_s12, %s692_s23  ;;  %s47_s27 = sadd.s32 1, %s615_s11 }
  0x10   : > { %p415_p10 = pnand %p414_p9, %p61_p1  ;;  %p45_p12 = scmp.eq.s32.totalorder %s44_s26, 0 }
  0x11   : > { %p54_p13 = scmp.ne.s32.totalorder %s615_s11, %s611_s10  ;;  %p55_p0 = scmp.eq.s32.totalorder %s619_s12, 0 }
  0x12   : > { %417 = dma.hbm_to_vmem [thread:$0]  (!%p415_p10), %s109_s19, 1024, %s111_s22, [#allocation3], %s622_s24, %s622_s24, %s623_s25  }
  0x13   : > { %s704_s28 = scalar_select %p45_p12, %s615_s11, %s47_s27  }
  0x14   : > { %p708_p3 = por %p84_p2, %p54_p13  ;;  %p427_p5 = scmp.lt.s32.totalorder %s619_s12, 2 }
  0x15   : > { %s124_s30 = sand.u32 1, %s615_s11   ;;  %s405_s3 = sshll.u32 %s619_s12, 6 }
  0x16   : > { %p56_p7 = por %p55_p0, %p54_p13  ;;  %s397_s4 = sshll.u32 %s124_s30, 6 }
  0x17   : > { %s133_s7 = scalar_lea.hbm %s835_s1, %s405_s3  ;;  %s128_s14 = scalar_lea.vmem [#allocation5], %s397_s4 }
  0x18   : > { %s134_s8 = sshll.u32 %s133_s7, 4  ;;  %s136_s17 = sshll.u32 %s128_s14, 4  ;;  %s135_s8 = int_to_ptr.hbm [resolvable:$true] %s134_s8  ;;  %s137_s17 = int_to_ptr.vmem [resolvable:$true] %s136_s17 }
  0x19   : > { %p718_p9 = pnand %p427_p5, %p56_p7  ;;  %s125_s19 = scalar_lea.sflag [#allocation6], %s124_s30 }
  0x1a   : > { %s519_s21 = sshra.s32 %s135_s8, 4  ;;  %s526_s3 = scalar_lea.hbm %s835_s1, 128  ;;  %s520_s21 = int_to_ptr.hbm [resolvable:$true] %s519_s21 }
  0x1b   : > { %s521_s22 = scalar_lea.hbm %s520_s21, 64  ;;  %p523_p10 = pneg %p718_p9 }
  0x1c   : > { %p522_p2 = scmp.ne.s32.totalorder %s520_s21, %s521_s22  ;;  %p527_p0 = scmp.lt.s32.totalorder %s520_s21, %s835_s1 }
  0x1d   : > { %p528_p5 = scmp.lt.s32.totalorder %s526_s3, %s521_s22 }
  0x1e   : > { %p524_p12 = pnand %p523_p10, %p522_p2 }
  0x1f   : > { %p529_p7 = por %p528_p5, %p527_p0 }
  0x20   : > { %p525_p13 = pneg %p524_p12 }
  0x22   : > { %p530_p11 = pnand %p529_p7, %p525_p13 }
  0x24   : > { %533 = shalt.err (!%p530_p11)
}
  0x25   : > { %421 = dma.hbm_to_vmem [thread:$0]  (!%p718_p9), %s135_s8, 1024, %s137_s17, %s125_s19, %s622_s24, %s622_s24, %s623_s25  }
  0x26   : > { %148 = sbr.rel (%p682_p8) target bundleno = 331 (0x14b), region = 28 }
  0x2b   : > { %594 = dma.done.wait (%p61_p1), [#allocation3], 1024  }
  0x2c   : > { %596 = vsyncadd (%p61_p1), [#allocation3], 4294966272  ;;  %s742_s30 = sand.u32 1, %s611_s10  }
  0x2d   : > { %s402_s6 = sshll.u32 %s742_s30, 6  ;;  %s156_s7 = scalar_lea.sflag [#allocation6], %s742_s30 }
  0x2e   : > { %s159_s14 = scalar_lea.vmem [#allocation5], %s402_s6 }
  0x2f   : > { %598 = dma.done.wait (%p669_p4), %s156_s7, 1024  }
  0x30   : > { %600 = vsyncadd (%p669_p4), %s156_s7, 4294966272  ;;  %v750_v0 = vld [vmem:[%s159_s14 + $0x20] sm:$0xff]  ;;  %v752_v1 = vld [vmem:[%s159_s14 + $0x28] sm:$0xff]  ;;  %vm289_vm0 = vcmask 130112   ;;  %s311_s24 = scalar_lea.hbm %s836_s2, %s660_s13  ;;  %vm293_vm1 = vcmask 195712   ;;  %s179_s25 = scalar_lea.vmem [#allocation7], %s742_s30 }
  0x31   : > { %v754_v2 = vld [vmem:[%s159_s14] sm:$0xff]  ;;  %v202_v3 = vmax.f32 %v750_v0, %v752_v1  ;;  %v758_v4 = vld [vmem:[%s159_s14 + $0x8] sm:$0xff]  ;;  %v762_v6 = vld [vmem:[%s159_s14 + $0x30] sm:$0xff]  ;;  %s313_s8 = sshll.u32 %s179_s25, 4  ;;  %s315_s17 = sshll.u32 %s311_s24, 4  ;;  %vm297_vm2 = vcmask 261312   ;;  %s314_s8 = int_to_ptr.vmem [resolvable:$true] %s313_s8  ;;  %s316_s17 = int_to_ptr.hbm [resolvable:$true] %s315_s17 }
  0x32   : > { %v196_v5 = vmax.f32 %v754_v2, %v758_v4  ;;  %v764_v7 = vld [vmem:[%s159_s14 + $0x38] sm:$0xff]  ;;  %v182_v8 = vld [vmem:[%s159_s14 + $0x10] sm:$0xff]  ;;  %v192_v45 = vld [vmem:[#allocation2 + $0x20] sm:$0xff]  ;;  %vm300_vm3 = vcmask 253952   ;;  %s303_s13 = scalar_lea.sflag [#allocation4], %s742_s30  ;;  %s563_s18 = sshra.s32 %s316_s17, 4  ;;  %s564_s18 = int_to_ptr.hbm [resolvable:$true] %s563_s18 }
  0x33   : > { %203 = vmax.xlane.f32.xlu1 %v202_v3  ;;  %v183_v9 = vld [vmem:[%s159_s14 + $0x18] sm:$0xff]  ;;  %v205_v10 = vmax.f32 %v762_v6, %v764_v7  ;;  %v190_v34 = vld [vmem:[#allocation2 + $0x10] sm:$0xff]  ;;  %v193_v46 = vld [vmem:[#allocation2 + $0x28] sm:$0xff]  ;;  %v260_v53 = vmul.f32 %v192_v45, %v750_v0  ;;  %s565_s19 = scalar_lea.hbm %s564_s18, 1  ;;  %s569_s26 = scalar_lea.hbm %s836_s2, 2 }
  0x34   : > { %197 = vmax.xlane.f32.xlu0 %v196_v5  ;;  %v199_v11 = vmax.f32 %v182_v8, %v183_v9  ;;  %v191_v35 = vld [vmem:[#allocation2 + $0x18] sm:$0xff]  ;;  %v258_v40 = vmul.f32 %v190_v34, %v182_v8  ;;  %v188_v50 = vld [vmem:[#allocation2] sm:$0xff]  ;;  %v189_v51 = vld [vmem:[#allocation2 + $0x8] sm:$0xff]  ;;  %v261_v54 = vmul.f32 %v193_v46, %v752_v1  ;;  %v284_v5 = vlaneseq  ;;  %p566_p1 = scmp.ne.s32.totalorder %s564_s18, %s565_s19  ;;  %p570_p11 = scmp.lt.s32.totalorder %s564_s18, %s836_s2 }
  0x35   : > { %v259_v41 = vmul.f32 %v191_v35, %v183_v9  ;;  %v256_v55 = vmul.f32 %v188_v50, %v754_v2  ;;  %v257_v56 = vmul.f32 %v189_v51, %v758_v4  ;;  %v194_v59 = vld [vmem:[#allocation2 + $0x30] sm:$0xff]  ;;  %v195_v60 = vld [vmem:[#allocation2 + $0x38] sm:$0xff]  ;;  %p571_p9 = scmp.lt.s32.totalorder %s569_s26, %s565_s19 }
  0x36   : > { %v270_v57 = vadd.f32 %v261_v54, %v260_v53  ;;  %v262_v61 = vmul.f32 %v194_v59, %v762_v6  ;;  %v263_v62 = vmul.f32 %v195_v60, %v764_v7  ;;  %p567_p4 = pnand %p566_p1, %p708_p3 }
  0x37   : > { %v267_v43 = vadd.f32 %v259_v41, %v258_v40  ;;  %v264_v58 = vadd.f32 %v257_v56, %v256_v55  ;;  %p572_p2 = por %p571_p9, %p570_p11 }
  0x38   : > { %v273_v63 = vadd.f32 %v263_v62, %v262_v61  ;;  %p568_p8 = pneg %p567_p4 }
  0x3a   : > { %p573_p10 = pnand %p572_p2, %p568_p8 }
  0x3b   : > { %206 = vmax.xlane.f32.xlu1 %v205_v10 }
  0x3c   : > { %200 = vmax.xlane.f32.xlu0 %v199_v11 }
  0xa6   : > { %v768_v12 = vpop.xlane.xlu1 %203 }
  0xa7   : > { %v212_v13 = vsub.f32 %v750_v0, %v768_v12  ;;  %v213_v14 = vsub.f32 %v752_v1, %v768_v12  ;;  %v774_v15 = vpop.xlane.xlu0 %197 }
  0xa8   : > { %v208_v16 = vsub.f32 %v754_v2, %v774_v15  ;;  %v209_v17 = vsub.f32 %v758_v4, %v774_v15 }
  0xa9   : > { %v224_v18 = vmul.f32 1.442695, %v212_v13  ;;  %v226_v19 = vmul.f32 1.442695, %v213_v14 }
  0xaa   : > { %v216_v20 = vmul.f32 1.442695, %v208_v16  ;;  %v218_v21 = vmul.f32 1.442695, %v209_v17 }
  0xab   : > { %465 = vpow2.f32 %v224_v18 }
  0xac   : > { %467 = vpow2.f32 %v226_v19 }
  0xad   : > { %469 = vpow2.f32 %v216_v20 }
  0xae   : > { %471 = vpow2.f32 %v218_v21  ;;  %v780_v22 = vpop.xlane.xlu1 %206 }
  0xaf   : > { %v214_v23 = vsub.f32 %v762_v6, %v780_v22  ;;  %v215_v24 = vsub.f32 %v764_v7, %v780_v22  ;;  %v786_v25 = vpop.xlane.xlu0 %200  ;;  %v285_v7 = vand.u32 127, %v284_v5 }
  0xb0   : > { %v210_v26 = vsub.f32 %v182_v8, %v786_v25  ;;  %v211_v27 = vsub.f32 %v183_v9, %v786_v25 }
  0xb1   : > { %v466_v28 = vpop.eup %465  ;;  %v228_v29 = vmul.f32 1.442695, %v214_v23  ;;  %v230_v30 = vmul.f32 1.442695, %v215_v24  ;;  %v287_v19 = vadd.s32 4294967288, %v285_v7 }
  0xb2   : > { %v468_v31 = vpop.eup %467  ;;  %v220_v32 = vmul.f32 1.442695, %v210_v26  ;;  %v222_v33 = vmul.f32 1.442695, %v211_v27  ;;  %v291_v27 = vadd.s32 4294967280, %v285_v7 }
  0xb3   : > { %v470_v36 = vpop.eup %469  ;;  %473 = vpow2.f32 %v228_v29  ;;  %v238_v37 = vadd.f32 %v468_v31, %v466_v28 }
  0xb4   : > { %v472_v38 = vpop.eup %471  ;;  %475 = vpow2.f32 %v230_v30 }
  0xb5   : > { %477 = vpow2.f32 %v220_v32  ;;  %239 = vadd.xlane.f32.xlu0 %v238_v37  ;;  %v232_v39 = vadd.f32 %v472_v38, %v470_v36 }
  0xb6   : > { %479 = vpow2.f32 %v222_v33 }
  0xb7   : > { %233 = vadd.xlane.f32.xlu2 %v232_v39 }
  0xb9   : > { %v474_v42 = vpop.eup %473 }
  0xba   : > { %v476_v44 = vpop.eup %475 }
  0xbb   : > { %v478_v47 = vpop.eup %477  ;;  %v241_v48 = vadd.f32 %v476_v44, %v474_v42 }
  0xbc   : > { %v480_v49 = vpop.eup %479 }
  0xbd   : > { %242 = vadd.xlane.f32.xlu1 %v241_v48  ;;  %v235_v52 = vadd.f32 %v480_v49, %v478_v47  ;;  %268 = vadd.xlane.f32.xlu0 %v267_v43 }
  0xbf   : > { %236 = vadd.xlane.f32.xlu2 %v235_v52 }
  0xc5   : > { %271 = vadd.xlane.f32.xlu1 %v270_v57 }
  0xc7   : > { %265 = vadd.xlane.f32.xlu2 %v264_v58 }
  0xcf   : > { %274 = vadd.xlane.f32.xlu2 %v273_v63 }
 0x128   : > { %v240_v1 = vpop.xlane.xlu0 %239 }
 0x12a   : > { %v234_v0 = vpop.xlane.xlu2 %233 }
 0x12b   : > { %481 = vlog2.f32 %v234_v0 }
 0x12c   : > { %483 = vlog2.f32 %v240_v1 }
 0x130   : > { %v243_v3 = vpop.xlane.xlu1 %242  ;;  %v269_v17 = vpop.xlane.xlu0 %268 }
 0x131   : > { %v482_v4 = vpop.eup %481 }
 0x132   : > { %v237_v2 = vpop.xlane.xlu2 %236  ;;  %v484_v8 = vpop.eup %483  ;;  %v245_v9 = vmul.f32 0.6931472, %v482_v4 }
 0x133   : > { %485 = vlog2.f32 %v237_v2  ;;  %v249_v13 = vmul.f32 0.6931472, %v484_v8 }
 0x134   : > { %487 = vlog2.f32 %v243_v3  ;;  %v252_v16 = vadd.f32 %v245_v9, %v774_v15 }
 0x135   : > { %v254_v24 = vadd.f32 %v249_v13, %v768_v12 }
 0x138   : > { %v272_v21 = vpop.xlane.xlu1 %271 }
 0x139   : > { %v486_v10 = vpop.eup %485  ;;  %v278_v28 = vsub.f32 %v254_v24, %v272_v21 }
 0x13a   : > { %v488_v11 = vpop.eup %487  ;;  %v247_v6 = vmul.f32 0.6931472, %v486_v10  ;;  %v266_v14 = vpop.xlane.xlu2 %265 }
 0x13b   : > { %v251_v20 = vmul.f32 0.6931472, %v488_v11  ;;  %v276_v23 = vsub.f32 %v252_v16, %v266_v14  ;;  %v292_v12 = vperm.slane %v278_v28, %v291_v27 }
 0x13c   : > { %v253_v18 = vadd.f32 %v247_v6, %v786_v25  ;;  %v295_v25 = vadd.s32 4294967272, %v285_v7 }
 0x13d   : > { %v286_v15 = vperm.slane %v276_v23, %v285_v7  ;;  %v255_v30 = vadd.f32 %v251_v20, %v780_v22 }
 0x13e   : > { %v277_v26 = vsub.f32 %v253_v18, %v269_v17 }
 0x140   : > { %v288_v29 = vperm.slane %v277_v26, %v287_v19 }
 0x142   : > { %v275_v31 = vpop.xlane.xlu2 %274  ;;  %v290_v32 = vsel %vm289_vm0, %v288_v29, %v286_v15 }
 0x143   : > { %v279_v33 = vsub.f32 %v255_v30, %v275_v31  ;;  %v294_v35 = vsel %vm293_vm1, %v292_v12, %v290_v32 }
 0x145   : > { %v296_v34 = vperm.slane %v279_v33, %v295_v25 }
 0x147   : > { %v298_v36 = vsel %vm297_vm2, %v296_v34, %v294_v35 }
 0x148   : > { %301 = vst.msk [vmem:[%s179_s25] sm:$0x1] %vm300_vm3, %v298_v36 }
 0x149   : > { %576 = shalt.err (!%p573_p10)
}
 0x14a   : > { %412 = dma.vmem_to_hbm [thread:$0]  (%p708_p3), %s314_s8, 16, %s316_s17, %s303_s13  }
 0x14b PF: > { %s327_s4 = sand.u32 1, %s607_s9   ;;  %p842_p12 = scmp.ge.s32.totalorder %s619_s12, 2 }
 0x14c   : > { %s328_s5 = scalar_lea.sflag [#allocation4], %s327_s4 }
 0x14d   : > { %p423_p13 = pnand %p842_p12, %p674_p6 }
 0x14f   : > { %p424_p0 = pneg %p423_p13 }
 0x151   : > { %602 = dma.done.wait (%p424_p0), %s328_s5, 16  }
 0x152   : > { %604 = vsyncadd (%p424_p0), %s328_s5, 4294967280  ;;  %p16_p5 = scmp.ge.s32.totalorder %s692_s23, 4   ;;  %s843_s9 = smov %s611_s10 }
 0x153   : > { %s844_s10 = smov %s615_s11  ;;  %s845_s11 = smov %s704_s28 }
 0x154   : > { %s846_s12 = smov %s692_s23  ;;  %18 = sbr.rel (!%p16_p5) target bundleno = 6 (0x6), region = 78 }
 0x159   :  { %333 = vsyncpa [#allocation3], 1 }
 0x15a   :  { %335 = vsyncpa [#allocation3 + $0x1], 1 }
 0x15b   :  { %336 = vsyncpa [#allocation6], 1 }
 0x15c   :  { %338 = vsyncpa [#allocation6 + $0x1], 1 }
 0x15d   :  { %339 = vsyncpa [#allocation4], 1 }
 0x15e   :  { %341 = vsyncpa [#allocation4 + $0x1], 1 }

</bundles_post_ra>
